<compile_context>
chip_gen: v5e
topology: v5e:2x2
jax: 0.10.0
libtpu: 0.0.40
codegen_flags: <defaults>
</compile_context>

<pallas_src>
import numpy as np

import jax
import jax.numpy as jnp
from jax import lax
from jax.experimental import pallas as pl
from jax.experimental.pallas import tpu as pltpu


def _ffn_kernel(x_ref, w1_ref, b1_ref, w2_ref, b2_ref, o_ref):
    # Per grid step:
    #   x_ref : (bm, d_model)        activations
    #   w1_ref: (d_ff, d_model)      PyTorch nn.Linear layout (out, in)
    #   b1_ref: (1, d_ff)            f32
    #   w2_ref: (d_model, d_ff)      PyTorch nn.Linear layout (out, in)
    #   b2_ref: (1, d_model)         f32
    #   o_ref : (bm, d_model)
    mxu_dtype = w1_ref.dtype
    x = x_ref[...].astype(mxu_dtype)

    # First Linear: contract over the "in" dim of both operands, so the
    # PyTorch (out, in) weight layout feeds the MXU directly (no transpose).
    h = lax.dot_general(
        x, w1_ref[...],
        dimension_numbers=(((1,), (1,)), ((), ())),
        preferred_element_type=jnp.float32,
    )
    # Bias + ReLU epilogue in f32 over the f32 MXU accumulator.
    h = jnp.maximum(h + b1_ref[...], 0.0)
    # TODO(synk): nn.Dropout(p=0.1) is the identity at inference; training-mode
    # stochastic dropout (pltpu.prng_seed / prng_random_bits + mask) is
    # intentionally not implemented here.

    # Second Linear (cast hidden to the MXU dtype only for the matmul inputs).
    y = lax.dot_general(
        h.astype(w2_ref.dtype), w2_ref[...],
        dimension_numbers=(((1,), (1,)), ((), ())),
        preferred_element_type=jnp.float32,
    )
    o_ref[...] = (y + b2_ref[...]).astype(o_ref.dtype)


def feedforward_pallas(x, w1, b1, w2, b2, *, block_m=512, out_dtype=None):
    """FeedForward forward pass (eval mode).

    x : (..., d_model)
    w1: (d_ff, d_model)   PyTorch nn.Linear weight layout (out, in); d_ff = 4*d_model
    b1: (d_ff,)
    w2: (d_model, d_ff)
    b2: (d_model,)
    Weights may be bf16 (recommended: MXU-native, half the VMEM/HBM footprint)
    or f32; accumulation is always f32.
    """
    orig_shape = x.shape
    d_model = orig_shape[-1]
    d_ff = w1.shape[0]
    assert w1.shape == (d_ff, d_model) and w2.shape == (d_model, d_ff)
    assert b1.shape == (d_ff,) and b2.shape == (d_model,)
    assert block_m % 8 == 0
    if out_dtype is None:
        out_dtype = x.dtype

    # Flatten all leading dims into the matmul M dimension (free reshape).
    m = int(np.prod(orig_shape[:-1])) if len(orig_shape) > 1 else 1
    x2 = x.reshape(m, d_model)

    # Large row tile; a single grid step when the whole problem fits.
    # No padding: ragged tail blocks read OOB (unspecified rows, harmless —
    # rows are independent) and their OOB output stores are dropped.
    bm = m if m <= block_m else block_m
    grid = (int(pl.cdiv(m, bm)),)

    b1r = jnp.asarray(b1, jnp.float32).reshape(1, d_ff)
    b2r = jnp.asarray(b2, jnp.float32).reshape(1, d_model)

    out = pl.pallas_call(
        _ffn_kernel,
        out_shape=jax.ShapeDtypeStruct((m, d_model), out_dtype),
        grid_spec=pltpu.PrefetchScalarGridSpec(
            num_scalar_prefetch=0,
            grid=grid,
            in_specs=[
                pl.BlockSpec((bm, d_model), lambda i: (i, 0)),
                # Weights/biases: constant index_map -> resident in VMEM across
                # grid steps (no re-DMA between consecutive steps).
                pl.BlockSpec((d_ff, d_model), lambda i: (0, 0)),
                pl.BlockSpec((1, d_ff), lambda i: (0, 0)),
                pl.BlockSpec((d_model, d_ff), lambda i: (0, 0)),
                pl.BlockSpec((1, d_model), lambda i: (0, 0)),
            ],
            out_specs=pl.BlockSpec((bm, d_model), lambda i: (i, 0)),
        ),
        compiler_params=pltpu.CompilerParams(
            dimension_semantics=("parallel",)),
    )(x2, w1, b1r, w2, b2r)

    return out.reshape(orig_shape[:-1] + (d_model,))


def feedforward_reference(x, w1, b1, w2, b2):
    """Pure-JAX f32 reference matching the PyTorch module in eval mode."""
    w1f = jnp.asarray(w1, jnp.float32)
    w2f = jnp.asarray(w2, jnp.float32)
    h = jnp.maximum(jnp.einsum('...i,oi->...o', x, w1f) + b1, 0.0)
    return jnp.einsum('...i,oi->...o', h, w2f) + b2


if __name__ == "__main__":
    # FeedForward(d_model=32): Linear(32, 128) -> ReLU -> Linear(128, 32)
    B, T, D = 2, 8, 32
    DFF = 4 * D

    key = jax.random.PRNGKey(0)
    kx, kw1, kb1, kw2, kb2 = jax.random.split(key, 5)
    x = jax.random.normal(kx, (B, T, D), dtype=jnp.float32)
    # Parameters materialized once at "init": bf16 weights (MXU-native, no
    # per-call cast/transpose pass), f32 biases (PyTorch layout: (out, in)).
    w1 = (jax.random.normal(kw1, (DFF, D), jnp.float32) / np.sqrt(D)).astype(jnp.bfloat16)
    b1 = jax.random.normal(kb1, (DFF,), jnp.float32) * 0.1
    w2 = (jax.random.normal(kw2, (D, DFF), jnp.float32) / np.sqrt(DFF)).astype(jnp.bfloat16)
    b2 = jax.random.normal(kb2, (D,), jnp.float32) * 0.1

    out = feedforward_pallas(x, w1, b1, w2, b2)
    out = jax.block_until_ready(out)

    ref = feedforward_reference(x, w1, b1, w2, b2)
    assert out.shape == (B, T, D)
    # bf16 MXU inputs vs f32 reference -> relaxed tolerance.
    np.testing.assert_allclose(np.asarray(out), np.asarray(ref),
                               rtol=5e-2, atol=5e-2)
    print("KERNEL_OK")
</pallas_src>

<mosaic_0001>
module attributes {stable_mosaic.version = 11 : i64} {
  func.func @_ffn_kernel(%arg0: i32, %arg1: memref<16x32xf32, #tpu.memory_space<vmem>>, %arg2: memref<128x32xbf16, #tpu.memory_space<vmem>>, %arg3: memref<1x128xf32, #tpu.memory_space<vmem>>, %arg4: memref<32x128xbf16, #tpu.memory_space<vmem>>, %arg5: memref<1x32xf32, #tpu.memory_space<vmem>>, %arg6: memref<16x32xf32, #tpu.memory_space<vmem>>) attributes {dimension_semantics = [#tpu.dimension_semantics<parallel>], iteration_bounds = array<i64: 1>, scalar_prefetch = 0 : i64, scratch_operands = 0 : i64, tpu.core_type = #tpu.core_type<tc>, window_params = [{transform_indices = @transform_0, window_bounds = array<i64: 16, 32>}, {pipeline_mode = #tpu.pipeline_mode<synchronous>, transform_indices = @transform_1, window_bounds = array<i64: 128, 32>}, {pipeline_mode = #tpu.pipeline_mode<synchronous>, transform_indices = @transform_2, window_bounds = array<i64: 1, 128>}, {pipeline_mode = #tpu.pipeline_mode<synchronous>, transform_indices = @transform_3, window_bounds = array<i64: 32, 128>}, {pipeline_mode = #tpu.pipeline_mode<synchronous>, transform_indices = @transform_4, window_bounds = array<i64: 1, 32>}, {transform_indices = @transform_5, window_bounds = array<i64: 16, 32>}]} {
    %c0 = arith.constant 0 : index
    %c0_0 = arith.constant 0 : index
    %0 = vector.load %arg1[%c0, %c0_0] : memref<16x32xf32, #tpu.memory_space<vmem>>, vector<16x32xf32>
    %1 = arith.truncf %0 : vector<16x32xf32> to vector<16x32xbf16>
    %c0_1 = arith.constant 0 : index
    %c0_2 = arith.constant 0 : index
    %2 = vector.load %arg2[%c0_1, %c0_2] : memref<128x32xbf16, #tpu.memory_space<vmem>>, vector<128x32xbf16>
    %cst = arith.constant dense<0.000000e+00> : vector<16x128xf32>
    %3 = tpu.matmul %1, %2, %cst {dimension_numbers = #tpu.dot_dimension_numbers<[1], [1], [0], [0], [0, 0, 1, 0], [], []>} : vector<16x32xbf16>, vector<128x32xbf16>, vector<16x128xf32> -> vector<16x128xf32>
    %c0_3 = arith.constant 0 : index
    %c0_4 = arith.constant 0 : index
    %4 = vector.load %arg3[%c0_3, %c0_4] : memref<1x128xf32, #tpu.memory_space<vmem>>, vector<1x128xf32>
    %5 = vector.broadcast %4 : vector<1x128xf32> to vector<16x128xf32>
    %6 = arith.addf %3, %5 : vector<16x128xf32>
    %cst_5 = arith.constant 0.000000e+00 : f32
    %7 = vector.broadcast %cst_5 : f32 to vector<16x128xf32>
    %8 = arith.maximumf %6, %7 : vector<16x128xf32>
    %9 = arith.truncf %8 : vector<16x128xf32> to vector<16x128xbf16>
    %c0_6 = arith.constant 0 : index
    %c0_7 = arith.constant 0 : index
    %10 = vector.load %arg4[%c0_6, %c0_7] : memref<32x128xbf16, #tpu.memory_space<vmem>>, vector<32x128xbf16>
    %cst_8 = arith.constant dense<0.000000e+00> : vector<16x32xf32>
    %11 = tpu.matmul %9, %10, %cst_8 {dimension_numbers = #tpu.dot_dimension_numbers<[1], [1], [0], [0], [0, 0, 1, 0], [], []>} : vector<16x128xbf16>, vector<32x128xbf16>, vector<16x32xf32> -> vector<16x32xf32>
    %c0_9 = arith.constant 0 : index
    %c0_10 = arith.constant 0 : index
    %12 = vector.load %arg5[%c0_9, %c0_10] : memref<1x32xf32, #tpu.memory_space<vmem>>, vector<1x32xf32>
    %13 = vector.broadcast %12 : vector<1x32xf32> to vector<16x32xf32>
    %14 = arith.addf %11, %13 : vector<16x32xf32>
    %c0_11 = arith.constant 0 : index
    %c0_12 = arith.constant 0 : index
    %15 = vector.load %arg6[%c0_11, %c0_12] : memref<16x32xf32, #tpu.memory_space<vmem>>, vector<16x32xf32>
    tpu.vector_store %arg6[%c0_11, %c0_12], %14 {strides = array<i32>} : memref<16x32xf32, #tpu.memory_space<vmem>>, vector<16x32xf32>,
    return
  }
  func.func @transform_0(%arg0: i32) -> (i32, i32) {
    %c0_i32 = arith.constant 0 : i32
    %c0_i32_0 = arith.constant 0 : i32
    return %arg0, %c0_i32 : i32, i32
  }
  func.func @transform_1(%arg0: i32) -> (i32, i32) {
    %c0_i32 = arith.constant 0 : i32
    %c0_i32_0 = arith.constant 0 : i32
    %c0_i32_1 = arith.constant 0 : i32
    return %c0_i32, %c0_i32_0 : i32, i32
  }
  func.func @transform_2(%arg0: i32) -> (i32, i32) {
    %c0_i32 = arith.constant 0 : i32
    %c0_i32_0 = arith.constant 0 : i32
    %c0_i32_1 = arith.constant 0 : i32
    return %c0_i32, %c0_i32_0 : i32, i32
  }
  func.func @transform_3(%arg0: i32) -> (i32, i32) {
    %c0_i32 = arith.constant 0 : i32
    %c0_i32_0 = arith.constant 0 : i32
    %c0_i32_1 = arith.constant 0 : i32
    return %c0_i32, %c0_i32_0 : i32, i32
  }
  func.func @transform_4(%arg0: i32) -> (i32, i32) {
    %c0_i32 = arith.constant 0 : i32
    %c0_i32_0 = arith.constant 0 : i32
    %c0_i32_1 = arith.constant 0 : i32
    return %c0_i32, %c0_i32_0 : i32, i32
  }
  func.func @transform_5(%arg0: i32) -> (i32, i32) {
    %c0_i32 = arith.constant 0 : i32
    %c0_i32_0 = arith.constant 0 : i32
    return %arg0, %c0_i32 : i32, i32
  }
}

</mosaic_0001>

<bundles_post_ra>
// kernel: tpu_custom_call.1
= control target key start
LH: loop header
LB: loop body
LE: loop exit
PB: predicated region body
PF: predicated region fallthrough
CT: control target
= control target key end

     0   :  { %vm85_vm0 = vcmask 261120   ;;  %s355_s0 = inlined_call_operand.vmem [shape: f32[16,32], index: 0, kind: input, shape index: {}]   ;;  %s356_s1 = inlined_call_operand.vmem [shape: bf16[128,32], index: 1, kind: input, shape index: {}]   ;;  %s357_s2 = inlined_call_operand.vmem [shape: f32[1,128], index: 2, kind: input, shape index: {}]   ;;  %s358_s3 = inlined_call_operand.vmem [shape: bf16[32,128], index: 3, kind: input, shape index: {}]   ;;  %s359_s4 = inlined_call_operand.vmem [shape: f32[1,32], index: 4, kind: input, shape index: {}]   ;;  %s360_s5 = inlined_call_operand.hbm [shape: f32[16,32], index: 5, kind: output, shape index: {}]  }
   0x1   :  { %v232_v0 = vld [vmem:[%s356_s1 + $0x38] sm:$0xff] }
   0x2   :  { %v111_v1 = vsel %vm85_vm0, %v232_v0, 0 }
   0x3   :  { %113 = vmatpush.bf16.xpose.msra.mxu0 %v111_v1 }
   0x4   :  { %10 = vsyncpa [#allocation3], 0  ;;  %v231_v2 = vld [vmem:[%s356_s1 + $0x30] sm:$0xff]  ;;  %v230_v4 = vld [vmem:[%s356_s1 + $0x28] sm:$0xff]  ;;  %s267_s22 = smov 128   ;;  %s268_s23 = smov 8  }
   0x5   :  { %v108_v3 = vsel %vm85_vm0, %v231_v2, 0  ;;  %v105_v5 = vsel %vm85_vm0, %v230_v4, 0  ;;  %v229_v6 = vld [vmem:[%s356_s1 + $0x20] sm:$0xff]  ;;  %v228_v8 = vld [vmem:[%s356_s1 + $0x18] sm:$0xff]  ;;  %v227_v10 = vld [vmem:[%s356_s1 + $0x10] sm:$0xff] }
   0x6   :  { %v102_v7 = vsel %vm85_vm0, %v229_v6, 0  ;;  %v99_v9 = vsel %vm85_vm0, %v228_v8, 0  ;;  %v96_v11 = vsel %vm85_vm0, %v227_v10, 0  ;;  %v226_v12 = vld [vmem:[%s356_s1 + $0x8] sm:$0xff]  ;;  %v225_v14 = vld [vmem:[%s356_s1] sm:$0xff] }
   0x7   :  { %v93_v13 = vsel %vm85_vm0, %v226_v12, 0  ;;  %v90_v15 = vsel %vm85_vm0, %v225_v14, 0  ;;  %v22_v16 = vld [vmem:[%s355_s0] sm:$0xff]  ;;  %v23_v17 = vld [vmem:[%s355_s0 + $0x8] sm:$0xff] }
   0x8   :  { %v24_v18 = vpack.c.bf16 %v23_v17, %v22_v16  ;;  %v234_v19 = vld [vmem:[%s358_s3 + $0x8] sm:$0xff]  ;;  %v233_v20 = vld [vmem:[%s358_s3] sm:$0xff]  ;;  %s266_s3 = smov [#allocation2]  }
   0x9   :  { %156 = vmatpush.bf16.xpose.msra.mxu1 %v234_v19  ;;  %v238_v22 = vld [vmem:[%s357_s2] ss:$0 sm:$0xff]  ;;  %s170_s19 = sshll.u32 %s266_s3, 4  ;;  %s172_s2 = sshll.u32 %s360_s5, 4  ;;  %s171_s19 = int_to_ptr.vmem [resolvable:$true] %s170_s19  ;;  %s173_s2 = int_to_ptr.hbm [resolvable:$true] %s172_s2 }
   0xa   :  { %v239_v29 = vld [vmem:[%s359_s4] ss:$0 sm:$0xff] }
   0xb   :  { %114 = vmatpush.bf16.xpose.msra.mxu0 %v108_v3 }
  0x11   :  { %157 = vmatpush.bf16.xpose.msra.mxu1 %v233_v20 }
  0x13   :  { %115 = vmatpush.bf16.xpose.msra.mxu0 %v105_v5 }
  0x1b   :  { %116 = vmatpush.bf16.xpose.msra.mxu0 %v102_v7 }
  0x23   :  { %117 = vmatpush.bf16.xpose.msra.mxu0 %v99_v9 }
  0x2b   :  { %118 = vmatpush.bf16.xpose.msra.mxu0 %v96_v11 }
  0x33   :  { %119 = vmatpush.bf16.xpose.msra.mxu0 %v93_v13 }
  0x3b   :  { %120 = vmatpush.bf16.xpose.msra.mxu0 %v90_v15 }
  0x42   :  { %216 = vmatmul.msk.bf16.vlgmr.msra.gmra.mxu0 %vm85_vm0, %v24_v18 }
  0xbf   :  { %v122_v21 = vpop.f32.mrf.mxu0 }
  0xc0   :  { %v123_v23 = vadd.f32 %v238_v22, %v122_v21 }
  0xc2   :  { %v127_v26 = vmax.f32 %v123_v23, 0.0 }
  0xc7   :  { %v124_v24 = vpop.f32.mrf.mxu0 }
  0xc8   :  { %v125_v25 = vadd.f32 %v238_v22, %v124_v24 }
  0xca   :  { %v128_v27 = vmax.f32 %v125_v25, 0.0 }
  0xcc   :  { %v129_v28 = vpack.c.bf16 %v128_v27, %v127_v26 }
  0xce   :  { %158 = vmatmul.bf16.vlgmr.msra.gmra.mxu1 %v129_v28 }
 0x14b   :  { %v159_v30 = vpop.f32.mrf.mxu1 }
 0x14c   :  { %v160_v31 = vadd.f32 %v239_v29, %v159_v30 }
 0x14e   :  { %164 = vst.msk [vmem:[#allocation2] sm:$0xff] %vm85_vm0, %v160_v31 }
 0x153   :  { %v161_v32 = vpop.f32.mrf.mxu1 }
 0x154   :  { %v162_v33 = vadd.f32 %v239_v29, %v161_v32 }
 0x156   :  { %165 = vst.msk [vmem:[#allocation2 + $0x8] sm:$0xff] %vm85_vm0, %v162_v33 }
 0x157   :  { %178 = dma.vmem_to_hbm [thread:$0]  %s171_s19, 256, %s173_s2, [#allocation3], %s267_s22, %s267_s22, %s268_s23  }
 0x158   :  { %264 = dma.done.wait [#allocation3], 256  }
 0x159   :  { %265 = vsyncadd [#allocation3], 4294967040 }
 0x15a   :  { %183 = vsyncpa [#allocation3], 1 }

</bundles_post_ra>
